<compile_context>
chip_gen: v6e
topology: v6e:2x2x1
jax: 0.10.0
libtpu: 0.0.40
codegen_flags: <defaults>
</compile_context>

<pallas_src>
import functools

import jax
import jax.numpy as jnp
from jax.experimental import pallas as pl
from jax.experimental.pallas import tpu as pltpu


def _round_up(n: int, m: int) -> int:
    return ((n + m - 1) // m) * m


def _cdiv(a: int, b: int) -> int:
    return -(-a // b)


# ---------------------------------------------------------------------------
# Kernel: one batch tile through all three Linear + ReLU layers (weights resident).
# ---------------------------------------------------------------------------
def mlp_kernel(x_ref, w1_ref, b1_ref, w2_ref, b2_ref, w3_ref, b3_ref, o_ref):
    # x arrives f32; cast to bf16 right before the MXU. All matmuls accumulate f32.
    x = x_ref[...].astype(jnp.bfloat16)
    h = jnp.dot(x, w1_ref[...], preferred_element_type=jnp.float32)
    h = jnp.maximum(h + b1_ref[...], 0.0)
    h = jnp.dot(h.astype(jnp.bfloat16), w2_ref[...], preferred_element_type=jnp.float32)
    h = jnp.maximum(h + b2_ref[...], 0.0)
    h = jnp.dot(h.astype(jnp.bfloat16), w3_ref[...], preferred_element_type=jnp.float32)
    h = jnp.maximum(h + b3_ref[...], 0.0)  # PyTorch module ReLUs the output layer too
    o_ref[...] = h.astype(o_ref.dtype)


# ---------------------------------------------------------------------------
# VMEM accounting + tile selection (generation-aware: safe on v7x's 64 MiB VMEM).
# ---------------------------------------------------------------------------
def _vmem_footprint(tb, d_in, d_h1, d_h2, d_out):
    w = (d_in * d_h1 + d_h1 * d_h2 + d_h2 * d_out) * 2            # bf16 weights, 1 buffer
    b = (d_h1 + d_h2 + d_out) * 4                                 # f32 biases, 1 buffer
    io = 2 * tb * d_in * 4 + 2 * tb * d_out * 4                   # x / out tiles, 2 buffers
    inter = tb * (d_h1 + d_h2 + d_out) * 4 + tb * (d_in + d_h1 + d_h2) * 2  # f32 + bf16 temps
    return w + b + io + inter


def _choose_tb(B, d_in, d_h1, d_h2, d_out, budget=48 * 1024 * 1024):
    if B <= 16:
        tb = 16                                        # single minimal (bf16-packed) tile
    elif B <= 512:
        tb = _round_up(_cdiv(B, 2), 16)                # >=2 grid steps (v7x has 2 TCs)
    else:
        tb = _round_up(_cdiv(B, _cdiv(B, 512)), 16)    # balanced ~512-row tiles, low pad waste
    while tb > 16 and _vmem_footprint(tb, d_in, d_h1, d_h2, d_out) > budget:
        tb -= 16                                       # shrink to stay inside v7x VMEM
    return tb


# ---------------------------------------------------------------------------
# One-time parameter preparation: pad to lane-dense shapes and cast (NOT per forward).
# ---------------------------------------------------------------------------
def prepare_params(params):
    w1, b1, w2, b2, w3, b3 = (params[k] for k in ("w1", "b1", "w2", "b2", "w3", "b3"))
    in_dim, h1 = w1.shape
    h2, out_dim = w2.shape[1], w3.shape[1]
    d_in, d_h1, d_h2, d_out = (_round_up(d, 128) for d in (in_dim, h1, h2, out_dim))

    def pad2(a, rows, cols, dtype):
        return jnp.pad(a, ((0, rows - a.shape[0]), (0, cols - a.shape[1]))).astype(dtype)

    return {
        "w1": pad2(w1, d_in, d_h1, jnp.bfloat16),
        "w2": pad2(w2, d_h1, d_h2, jnp.bfloat16),
        "w3": pad2(w3, d_h2, d_out, jnp.bfloat16),
        "b1": pad2(b1, 1, d_h1, jnp.float32),
        "b2": pad2(b2, 1, d_h2, jnp.float32),
        "b3": pad2(b3, 1, d_out, jnp.float32),
    }


# ---------------------------------------------------------------------------
# Forward wrapper.
# ---------------------------------------------------------------------------
@functools.partial(jax.jit, static_argnames=("out_dim", "tb"))
def neural_network_forward(x, prepped, *, out_dim, tb=None):
    """x: (B, in_dim) float32. prepped: output of prepare_params (padded bf16/f32)."""
    w1p, b1p = prepped["w1"], prepped["b1"]
    w2p, b2p = prepped["w2"], prepped["b2"]
    w3p, b3p = prepped["w3"], prepped["b3"]
    B, in_dim = x.shape
    d_in, d_h1 = w1p.shape
    d_h2, d_out = w3p.shape

    if tb is None:
        tb = _choose_tb(B, d_in, d_h1, d_h2, d_out)
    b_pad = _round_up(B, tb)

    # Pad x only when not already tile-aligned; keep f32 (cast to bf16 inside kernel).
    if b_pad != B or d_in != in_dim:
        xp = jnp.pad(x, ((0, b_pad - B), (0, d_in - in_dim)))
    else:
        xp = x

    # Resident (constant-index) params: single-buffered, DMA'd once, stay in VMEM.
    def resident(shape):
        return pl.BlockSpec(shape, lambda i: (0, 0), pipeline_mode=pl.Buffered(1))

    footprint = _vmem_footprint(tb, d_in, d_h1, d_h2, d_out)
    vmem_limit = min(max(int(footprint * 1.25), 8 * 1024 * 1024), 64 * 1024 * 1024)
    # TODO(synk): if resident weights alone ever exceed ~48 MiB (huge hidden dims on
    # v7x), fall back to per-layer pallas_calls or tile the hidden dimension.

    out_padded = pl.pallas_call(
        mlp_kernel,
        out_shape=jax.ShapeDtypeStruct((b_pad, d_out), jnp.float32),
        grid=(b_pad // tb,),
        in_specs=[
            pl.BlockSpec((tb, d_in), lambda i: (i, 0)),
            resident(w1p.shape), resident(b1p.shape),
            resident(w2p.shape), resident(b2p.shape),
            resident(w3p.shape), resident(b3p.shape),
        ],
        out_specs=pl.BlockSpec((tb, d_out), lambda i: (i, 0)),
        compiler_params=pltpu.CompilerParams(
            dimension_semantics=("parallel",),   # batch tiles shard across v7x's 2 TCs
            vmem_limit_bytes=vmem_limit,
        ),
    )(xp, w1p, b1p, w2p, b2p, w3p, b3p)

    # Slice away batch / lane padding (padded output lanes are exact zeros).
    return out_padded[:B, :out_dim]


# ---------------------------------------------------------------------------
# Init + references + self-test.
# ---------------------------------------------------------------------------
def init_params(key, in_dim, n_hidden_1, n_hidden_2, out_dim):
    """Deterministic init mimicking nn.Linear's U(-1/sqrt(fan_in), 1/sqrt(fan_in))."""
    keys = jax.random.split(key, 6)

    def linear(kw, kb, fan_in, fan_out):
        bound = 1.0 / jnp.sqrt(jnp.float32(fan_in))
        # stored as (fan_in, fan_out) == PyTorch weight.T
        w = jax.random.uniform(kw, (fan_in, fan_out), jnp.float32, -bound, bound)
        b = jax.random.uniform(kb, (1, fan_out), jnp.float32, -bound, bound)
        return w, b

    w1, b1 = linear(keys[0], keys[1], in_dim, n_hidden_1)
    w2, b2 = linear(keys[2], keys[3], n_hidden_1, n_hidden_2)
    w3, b3 = linear(keys[4], keys[5], n_hidden_2, out_dim)
    return {"w1": w1, "b1": b1, "w2": w2, "b2": b2, "w3": w3, "b3": b3}


def ref_forward_bf16(x, params):
    """Pure-JAX reference mirroring the kernel's bf16 matmul / f32 accumulation."""
    h = x
    for wi, bi in (("w1", "b1"), ("w2", "b2"), ("w3", "b3")):
        h = jnp.dot(h.astype(jnp.bfloat16), params[wi].astype(jnp.bfloat16),
                    preferred_element_type=jnp.float32) + params[bi]
        h = jnp.maximum(h, 0.0)
    return h


def ref_forward_f32(x, params):
    h = x
    for wi, bi in (("w1", "b1"), ("w2", "b2"), ("w3", "b3")):
        h = jnp.maximum(h @ params[wi] + params[bi], 0.0)
    return h


if __name__ == "__main__":
    key = jax.random.PRNGKey(0)
    k_x, k_p = jax.random.split(key)

    batch, in_dim, n_hidden_1, n_hidden_2, out_dim = 8, 32, 64, 64, 16
    x = jax.random.normal(k_x, (batch, in_dim), jnp.float32)
    params = init_params(k_p, in_dim, n_hidden_1, n_hidden_2, out_dim)
    prepped = prepare_params(params)   # one-time pad + cast (not per forward call)

    out = neural_network_forward(x, prepped, out_dim=out_dim)
    out = jax.block_until_ready(out)
    assert out.shape == (batch, out_dim)

    # Tight check against a reference using the same bf16-matmul / f32-accum recipe.
    ref_bf16 = ref_forward_bf16(x, params)
    assert jnp.allclose(out, ref_bf16, atol=1e-3, rtol=1e-3), "mismatch vs bf16 reference"

    # Loose sanity check against the full-f32 reference (bf16 quantization noise only).
    ref_f32 = ref_forward_f32(x, params)
    assert jnp.allclose(out, ref_f32, atol=1e-1, rtol=1e-1), "mismatch vs f32 reference"

    print("KERNEL_OK")
</pallas_src>

<mosaic_0001>
module attributes {stable_mosaic.version = 11 : i64} {
  func.func @mlp_kernel(%arg0: i32, %arg1: memref<16x128xf32, #tpu.memory_space<vmem>>, %arg2: memref<128x128xbf16, #tpu.memory_space<vmem>>, %arg3: memref<1x128xf32, #tpu.memory_space<vmem>>, %arg4: memref<128x128xbf16, #tpu.memory_space<vmem>>, %arg5: memref<1x128xf32, #tpu.memory_space<vmem>>, %arg6: memref<128x128xbf16, #tpu.memory_space<vmem>>, %arg7: memref<1x128xf32, #tpu.memory_space<vmem>>, %arg8: memref<16x128xf32, #tpu.memory_space<vmem>>) attributes {dimension_semantics = [#tpu.dimension_semantics<parallel>], iteration_bounds = array<i64: 1>, scalar_prefetch = 0 : i64, scratch_operands = 0 : i64, tpu.core_type = #tpu.core_type<tc>, window_params = [{transform_indices = @transform_0, window_bounds = array<i64: 16, 128>}, {pipeline_mode = #tpu.pipeline_mode<synchronous>, transform_indices = @transform_1, window_bounds = array<i64: 128, 128>}, {pipeline_mode = #tpu.pipeline_mode<synchronous>, transform_indices = @transform_2, window_bounds = array<i64: 1, 128>}, {pipeline_mode = #tpu.pipeline_mode<synchronous>, transform_indices = @transform_3, window_bounds = array<i64: 128, 128>}, {pipeline_mode = #tpu.pipeline_mode<synchronous>, transform_indices = @transform_4, window_bounds = array<i64: 1, 128>}, {pipeline_mode = #tpu.pipeline_mode<synchronous>, transform_indices = @transform_5, window_bounds = array<i64: 128, 128>}, {pipeline_mode = #tpu.pipeline_mode<synchronous>, transform_indices = @transform_6, window_bounds = array<i64: 1, 128>}, {transform_indices = @transform_7, window_bounds = array<i64: 16, 128>}]} {
    %c0 = arith.constant 0 : index
    %c0_0 = arith.constant 0 : index
    %0 = vector.load %arg1[%c0, %c0_0] : memref<16x128xf32, #tpu.memory_space<vmem>>, vector<16x128xf32>
    %1 = arith.truncf %0 : vector<16x128xf32> to vector<16x128xbf16>
    %c0_1 = arith.constant 0 : index
    %c0_2 = arith.constant 0 : index
    %2 = vector.load %arg2[%c0_1, %c0_2] : memref<128x128xbf16, #tpu.memory_space<vmem>>, vector<128x128xbf16>
    %cst = arith.constant dense<0.000000e+00> : vector<16x128xf32>
    %3 = tpu.matmul %1, %2, %cst {dimension_numbers = #tpu.dot_dimension_numbers<[1], [0], [0], [1], [0, 0, 1, 1], [], []>} : vector<16x128xbf16>, vector<128x128xbf16>, vector<16x128xf32> -> vector<16x128xf32>
    %c0_3 = arith.constant 0 : index
    %c0_4 = arith.constant 0 : index
    %4 = vector.load %arg3[%c0_3, %c0_4] : memref<1x128xf32, #tpu.memory_space<vmem>>, vector<1x128xf32>
    %5 = vector.broadcast %4 : vector<1x128xf32> to vector<16x128xf32>
    %6 = arith.addf %3, %5 : vector<16x128xf32>
    %cst_5 = arith.constant 0.000000e+00 : f32
    %7 = vector.broadcast %cst_5 : f32 to vector<16x128xf32>
    %8 = arith.maximumf %6, %7 : vector<16x128xf32>
    %9 = arith.truncf %8 : vector<16x128xf32> to vector<16x128xbf16>
    %c0_6 = arith.constant 0 : index
    %c0_7 = arith.constant 0 : index
    %10 = vector.load %arg4[%c0_6, %c0_7] : memref<128x128xbf16, #tpu.memory_space<vmem>>, vector<128x128xbf16>
    %cst_8 = arith.constant dense<0.000000e+00> : vector<16x128xf32>
    %11 = tpu.matmul %9, %10, %cst_8 {dimension_numbers = #tpu.dot_dimension_numbers<[1], [0], [0], [1], [0, 0, 1, 1], [], []>} : vector<16x128xbf16>, vector<128x128xbf16>, vector<16x128xf32> -> vector<16x128xf32>
    %c0_9 = arith.constant 0 : index
    %c0_10 = arith.constant 0 : index
    %12 = vector.load %arg5[%c0_9, %c0_10] : memref<1x128xf32, #tpu.memory_space<vmem>>, vector<1x128xf32>
    %13 = vector.broadcast %12 : vector<1x128xf32> to vector<16x128xf32>
    %14 = arith.addf %11, %13 : vector<16x128xf32>
    %cst_11 = arith.constant 0.000000e+00 : f32
    %15 = vector.broadcast %cst_11 : f32 to vector<16x128xf32>
    %16 = arith.maximumf %14, %15 : vector<16x128xf32>
    %17 = arith.truncf %16 : vector<16x128xf32> to vector<16x128xbf16>
    %c0_12 = arith.constant 0 : index
    %c0_13 = arith.constant 0 : index
    %18 = vector.load %arg6[%c0_12, %c0_13] : memref<128x128xbf16, #tpu.memory_space<vmem>>, vector<128x128xbf16>
    %cst_14 = arith.constant dense<0.000000e+00> : vector<16x128xf32>
    %19 = tpu.matmul %17, %18, %cst_14 {dimension_numbers = #tpu.dot_dimension_numbers<[1], [0], [0], [1], [0, 0, 1, 1], [], []>} : vector<16x128xbf16>, vector<128x128xbf16>, vector<16x128xf32> -> vector<16x128xf32>
    %c0_15 = arith.constant 0 : index
    %c0_16 = arith.constant 0 : index
    %20 = vector.load %arg7[%c0_15, %c0_16] : memref<1x128xf32, #tpu.memory_space<vmem>>, vector<1x128xf32>
    %21 = vector.broadcast %20 : vector<1x128xf32> to vector<16x128xf32>
    %22 = arith.addf %19, %21 : vector<16x128xf32>
    %cst_17 = arith.constant 0.000000e+00 : f32
    %23 = vector.broadcast %cst_17 : f32 to vector<16x128xf32>
    %24 = arith.maximumf %22, %23 : vector<16x128xf32>
    %c0_18 = arith.constant 0 : index
    %c0_19 = arith.constant 0 : index
    %25 = vector.load %arg8[%c0_18, %c0_19] : memref<16x128xf32, #tpu.memory_space<vmem>>, vector<16x128xf32>
    tpu.vector_store %arg8[%c0_18, %c0_19], %24 {strides = array<i32>} : memref<16x128xf32, #tpu.memory_space<vmem>>, vector<16x128xf32>,
    return
  }
  func.func @transform_0(%arg0: i32) -> (i32, i32) {
    %c0_i32 = arith.constant 0 : i32
    %c0_i32_0 = arith.constant 0 : i32
    return %arg0, %c0_i32 : i32, i32
  }
  func.func @transform_1(%arg0: i32) -> (i32, i32) {
    %c0_i32 = arith.constant 0 : i32
    %c0_i32_0 = arith.constant 0 : i32
    %c0_i32_1 = arith.constant 0 : i32
    return %c0_i32, %c0_i32_0 : i32, i32
  }
  func.func @transform_2(%arg0: i32) -> (i32, i32) {
    %c0_i32 = arith.constant 0 : i32
    %c0_i32_0 = arith.constant 0 : i32
    %c0_i32_1 = arith.constant 0 : i32
    return %c0_i32, %c0_i32_0 : i32, i32
  }
  func.func @transform_3(%arg0: i32) -> (i32, i32) {
    %c0_i32 = arith.constant 0 : i32
    %c0_i32_0 = arith.constant 0 : i32
    %c0_i32_1 = arith.constant 0 : i32
    return %c0_i32, %c0_i32_0 : i32, i32
  }
  func.func @transform_4(%arg0: i32) -> (i32, i32) {
    %c0_i32 = arith.constant 0 : i32
    %c0_i32_0 = arith.constant 0 : i32
    %c0_i32_1 = arith.constant 0 : i32
    return %c0_i32, %c0_i32_0 : i32, i32
  }
  func.func @transform_5(%arg0: i32) -> (i32, i32) {
    %c0_i32 = arith.constant 0 : i32
    %c0_i32_0 = arith.constant 0 : i32
    %c0_i32_1 = arith.constant 0 : i32
    return %c0_i32, %c0_i32_0 : i32, i32
  }
  func.func @transform_6(%arg0: i32) -> (i32, i32) {
    %c0_i32 = arith.constant 0 : i32
    %c0_i32_0 = arith.constant 0 : i32
    %c0_i32_1 = arith.constant 0 : i32
    return %c0_i32, %c0_i32_0 : i32, i32
  }
  func.func @transform_7(%arg0: i32) -> (i32, i32) {
    %c0_i32 = arith.constant 0 : i32
    %c0_i32_0 = arith.constant 0 : i32
    return %arg0, %c0_i32 : i32, i32
  }
}

</mosaic_0001>

<bundles_post_ra>
// kernel: neural_network_forward.1
= control target key start
LH: loop header
LB: loop body
LE: loop exit
PB: predicated region body
PF: predicated region fallthrough
CT: control target
= control target key end

     0   :  { %12 = vsyncpa [#allocation3], 0  ;;  %s739_s0 = inlined_call_operand.vmem [shape: f32[16,128], index: 0, kind: input, shape index: {}]   ;;  %s740_s1 = inlined_call_operand.hbm [shape: bf16[128,128], index: 1, kind: input, shape index: {}]   ;;  %s741_s2 = inlined_call_operand.vmem [shape: f32[1,128], index: 2, kind: input, shape index: {}]   ;;  %s742_s3 = inlined_call_operand.hbm [shape: bf16[128,128], index: 3, kind: input, shape index: {}]   ;;  %s743_s4 = inlined_call_operand.vmem [shape: f32[1,128], index: 4, kind: input, shape index: {}]   ;;  %s744_s5 = inlined_call_operand.hbm [shape: bf16[128,128], index: 5, kind: input, shape index: {}]   ;;  %s745_s6 = inlined_call_operand.vmem [shape: f32[1,128], index: 6, kind: input, shape index: {}]   ;;  %s746_s7 = inlined_call_operand.vmem [shape: f32[16,128], index: 7, kind: output, shape index: {}]  }
   0x1   :  { %13 = vsyncpa [#allocation5], 0  ;;  %s632_s24 = smov [#allocation4]   ;;  %s633_s26 = smov [#allocation2]  }
   0x2   :  { %s35_s25 = sshll.u32 %s632_s24, 4  ;;  %s21_s27 = sshll.u32 %s633_s26, 4  ;;  %s36_s25 = int_to_ptr.vmem [resolvable:$true] %s35_s25  ;;  %s22_s27 = int_to_ptr.vmem [resolvable:$true] %s21_s27 }
   0x3   :  { %s576_s28 = scalar_lea.vmem %s36_s25, 1024  ;;  %p581_p1 = scmp.lt.s32.totalorder %s36_s25, %s36_s25 }
   0x4   :  { %p577_p0 = scmp.ne.s32.totalorder %s36_s25, %s576_s28  ;;  %p582_p2 = scmp.lt.s32.totalorder %s576_s28, %s576_s28 }
   0x6   :  { %p583_p3 = por %p582_p2, %p581_p1 }
   0x8   :  { %p584_p4 = pnand %p583_p3, %p577_p0 }
   0xa   :  { %587 = shalt.err (!%p584_p4)
}
   0xb   :  { %s634_s29 = smov 64   ;;  %s635_s30 = smov 4  }
   0xc   :  { %41 = dma.hbm_to_vmem [thread:$0]  %s742_s3, 1024, %s36_s25, [#allocation5], %s634_s29, %s634_s29, %s635_s30  }
   0xd   :  { %s596_s10 = scalar_lea.vmem %s22_s27, 1024  ;;  %p601_p6 = scmp.lt.s32.totalorder %s22_s27, %s22_s27 }
   0xe   :  { %p597_p5 = scmp.ne.s32.totalorder %s22_s27, %s596_s10  ;;  %p602_p7 = scmp.lt.s32.totalorder %s596_s10, %s596_s10 }
  0x10   :  { %p603_p8 = por %p602_p7, %p601_p6 }
  0x12   :  { %p604_p9 = pnand %p603_p8, %p597_p5 }
  0x14   :  { %607 = shalt.err (!%p604_p9)
}
  0x15   :  { %27 = dma.hbm_to_vmem [thread:$0]  %s740_s1, 1024, %s22_s27, [#allocation3], %s634_s29, %s634_s29, %s635_s30  }
  0x16   :  { %s636_s13 = smov [#allocation6]  }
  0x17   :  { %s49_s14 = sshll.u32 %s636_s13, 4  ;;  %s50_s14 = int_to_ptr.vmem [resolvable:$true] %s49_s14 }
  0x18   :  { %s616_s15 = scalar_lea.vmem %s50_s14, 1024  ;;  %p621_p11 = scmp.lt.s32.totalorder %s50_s14, %s50_s14 }
  0x19   :  { %p617_p10 = scmp.ne.s32.totalorder %s50_s14, %s616_s15  ;;  %p622_p12 = scmp.lt.s32.totalorder %s616_s15, %s616_s15 }
  0x1b   :  { %p623_p13 = por %p622_p12, %p621_p11 }
  0x1d   :  { %p624_p0 = pnand %p623_p13, %p617_p10 }
  0x1f   :  { %627 = shalt.err (!%p624_p0)
}
  0x20   :  { %55 = dma.hbm_to_vmem [thread:$0]  %s744_s5, 1024, %s50_s14, [#allocation5], %s634_s29, %s634_s29, %s635_s30  }
  0x21   :  { %628 = dma.done.wait [#allocation3], 1024  }
  0x22   :  { %629 = vsyncadd [#allocation3], 4294966272 }
  0x23   :  { %630 = dma.done.wait [#allocation5], 2048  }
  0x24   :  { %631 = vsyncadd [#allocation5], 4294965248  ;;  %v637_v0 = vmov 0.0   ;;  %vm638_vm0 = vmmov 0   ;;  %v544_v1 = vld [vmem:[#allocation2 + $0x38] sm:$0xff]   ;;  %v545_v2 = vld [vmem:[#allocation2 + $0x30] sm:$0xff]  }
  0x25   :  { %477 = vmatprep.subr.bf16.mxu0 %v637_v0  ;;  %493 = vmatprep.mubr.msk.bf16.mxu0 %vm638_vm0, %v637_v0  ;;  %v546_v3 = vld [vmem:[#allocation2 + $0x28] sm:$0xff]   ;;  %v552_v4 = vld [vmem:[#allocation4 + $0x38] sm:$0xff]   ;;  %v547_v5 = vld [vmem:[#allocation2 + $0x20] sm:$0xff]  }
  0x26   :  { %497 = vmatprep.subr.bf16.mxu1 %v637_v0  ;;  %513 = vmatprep.mubr.msk.bf16.mxu1 %vm638_vm0, %v637_v0  ;;  %v553_v6 = vld [vmem:[#allocation4 + $0x30] sm:$0xff]   ;;  %v548_v7 = vld [vmem:[#allocation2 + $0x18] sm:$0xff]   ;;  %v554_v8 = vld [vmem:[#allocation4 + $0x28] sm:$0xff]  }
  0x27   :  { %478 = vmatpush3.bf16.msra.mxu0 %v544_v1  ;;  %498 = vmatpush3.bf16.msra.mxu1 %v552_v4  ;;  %v549_v9 = vld [vmem:[#allocation2 + $0x10] sm:$0xff]   ;;  %v555_v10 = vld [vmem:[#allocation4 + $0x20] sm:$0xff]   ;;  %v550_v11 = vld [vmem:[#allocation2 + $0x8] sm:$0xff]  }
  0x28   :  { %479 = vmatprep.subr.bf16.mxu0 %v637_v0  ;;  %499 = vmatprep.subr.bf16.mxu1 %v637_v0  ;;  %v556_v12 = vld [vmem:[#allocation4 + $0x18] sm:$0xff]   ;;  %v551_v13 = vld [vmem:[#allocation2] sm:$0xff]   ;;  %v69_v15 = vld [vmem:[%s739_s0 + $0x8] sm:$0xff] }
  0x29   :  { %v68_v14 = vld [vmem:[%s739_s0] sm:$0xff]  ;;  %v557_v17 = vld [vmem:[#allocation4 + $0x10] sm:$0xff]   ;;  %v558_v18 = vld [vmem:[#allocation4 + $0x8] sm:$0xff]  }
  0x2a   :  { %v70_v16 = vpack.c.bf16 %v69_v15, %v68_v14  ;;  %v559_v19 = vld [vmem:[#allocation4] sm:$0xff]   ;;  %v560_v20 = vld [vmem:[#allocation6 + $0x38] sm:$0xff]   ;;  %v561_v21 = vld [vmem:[#allocation6 + $0x30] sm:$0xff]  }
  0x2b   :  { %480 = vmatpush3.bf16.msra.mxu0 %v545_v2  ;;  %500 = vmatpush3.bf16.msra.mxu1 %v553_v6  ;;  %v562_v22 = vld [vmem:[#allocation6 + $0x28] sm:$0xff]   ;;  %v563_v23 = vld [vmem:[#allocation6 + $0x20] sm:$0xff]   ;;  %v564_v24 = vld [vmem:[#allocation6 + $0x18] sm:$0xff]  }
  0x2c   :  { %481 = vmatprep.subr.bf16.mxu0 %v637_v0  ;;  %501 = vmatprep.subr.bf16.mxu1 %v637_v0  ;;  %v423_v25 = vld [vmem:[%s741_s2] ss:$0 sm:$0xff]  ;;  %v565_v35 = vld [vmem:[#allocation6 + $0x10] sm:$0xff]   ;;  %v566_v36 = vld [vmem:[#allocation6 + $0x8] sm:$0xff]  }
  0x2d   :  { %v567_v37 = vld [vmem:[#allocation6] sm:$0xff]  }
  0x2e   :  { %v432_v38 = vld [vmem:[%s743_s4] ss:$0 sm:$0xff] }
  0x2f   :  { %482 = vmatpush3.bf16.msra.mxu0 %v546_v3  ;;  %502 = vmatpush3.bf16.msra.mxu1 %v554_v8  ;;  %v441_v48 = vld [vmem:[%s745_s6] ss:$0 sm:$0xff] }
  0x30   :  { %483 = vmatprep.subr.bf16.mxu0 %v637_v0  ;;  %503 = vmatprep.subr.bf16.mxu1 %v637_v0 }
  0x33   :  { %484 = vmatpush3.bf16.msra.mxu0 %v547_v5  ;;  %504 = vmatpush3.bf16.msra.mxu1 %v555_v10 }
  0x34   :  { %485 = vmatprep.subr.bf16.mxu0 %v637_v0  ;;  %505 = vmatprep.subr.bf16.mxu1 %v637_v0 }
  0x37   :  { %486 = vmatpush3.bf16.msra.mxu0 %v548_v7  ;;  %506 = vmatpush3.bf16.msra.mxu1 %v556_v12 }
  0x38   :  { %487 = vmatprep.subr.bf16.mxu0 %v637_v0  ;;  %507 = vmatprep.subr.bf16.mxu1 %v637_v0 }
  0x3b   :  { %488 = vmatpush3.bf16.msra.mxu0 %v549_v9  ;;  %508 = vmatpush3.bf16.msra.mxu1 %v557_v17 }
  0x3c   :  { %489 = vmatprep.subr.bf16.mxu0 %v637_v0  ;;  %509 = vmatprep.subr.bf16.mxu1 %v637_v0 }
  0x3f   :  { %490 = vmatpush3.bf16.msra.mxu0 %v550_v11  ;;  %510 = vmatpush3.bf16.msra.mxu1 %v558_v18 }
  0x40   :  { %491 = vmatprep.subr.bf16.mxu0 %v637_v0  ;;  %511 = vmatprep.subr.bf16.mxu1 %v637_v0 }
  0x43   :  { %492 = vmatpush3.bf16.msra.mxu0 %v551_v13  ;;  %512 = vmatpush3.bf16.msra.mxu1 %v559_v19 }
  0x44   :  { %517 = vmatprep.subr.bf16.mxu0 %v637_v0 }
  0x46   :  { %494 = vmatmul.mubr.bf16.vlgmr.msra.gmra.mxu0 %v70_v16 }
  0x47   :  { %533 = vmatprep.mubr.msk.bf16.mxu0 %vm638_vm0, %v637_v0  ;;  %518 = vmatpush3.bf16.msra.mxu0 %v560_v20 }
  0x48   :  { %519 = vmatprep.subr.bf16.mxu0 %v637_v0 }
  0x4b   :  { %520 = vmatpush3.bf16.msra.mxu0 %v561_v21 }
  0x4c   :  { %521 = vmatprep.subr.bf16.mxu0 %v637_v0 }
  0x4f   :  { %522 = vmatpush3.bf16.msra.mxu0 %v562_v22 }
  0x50   :  { %523 = vmatprep.subr.bf16.mxu0 %v637_v0 }
  0x53   :  { %524 = vmatpush3.bf16.msra.mxu0 %v563_v23 }
  0x54   :  { %525 = vmatprep.subr.bf16.mxu0 %v637_v0 }
  0x57   :  { %526 = vmatpush3.bf16.msra.mxu0 %v564_v24 }
  0x58   :  { %527 = vmatprep.subr.bf16.mxu0 %v637_v0 }
  0x5b   :  { %528 = vmatpush3.bf16.msra.mxu0 %v565_v35 }
  0x5c   :  { %529 = vmatprep.subr.bf16.mxu0 %v637_v0 }
  0x5f   :  { %530 = vmatpush3.bf16.msra.mxu0 %v566_v36 }
  0x60   :  { %531 = vmatprep.subr.bf16.mxu0 %v637_v0 }
  0x63   :  { %532 = vmatpush3.bf16.msra.mxu0 %v567_v37 }
 0x106   :  { %v176_v26 = vpop.f32.mrf.mxu0 }
 0x107   :  { %v177_v28 = vadd.f32 %v423_v25, %v176_v26 }
 0x108   :  { %v495_v27 = vpop.f32.mrf.mxu0 }
 0x109   :  { %v183_v32 = vmax.f32 %v177_v28, 0.0 }
 0x10a   :  { %v179_v29 = vpop.f32.mrf.mxu0 }
 0x10b   :  { %v180_v30 = vadd.f32 %v423_v25, %v179_v29 }
 0x10c   :  { %v496_v31 = vpop.f32.mrf.mxu0 }
 0x10d   :  { %v184_v33 = vmax.f32 %v180_v30, 0.0 }
 0x10f   :  { %v185_v34 = vpack.c.bf16 %v184_v33, %v183_v32 }
 0x111   :  { %514 = vmatmul.mubr.bf16.vlgmr.msra.gmra.mxu1 %v185_v34 }
 0x1d1   :  { %v291_v39 = vpop.f32.mrf.mxu1 }
 0x1d2   :  { %v292_v41 = vadd.f32 %v432_v38, %v291_v39 }
 0x1d3   :  { %v515_v40 = vpop.f32.mrf.mxu1 }
 0x1d4   :  { %v298_v45 = vmax.f32 %v292_v41, 0.0 }
 0x1d5   :  { %v294_v42 = vpop.f32.mrf.mxu1 }
 0x1d6   :  { %v295_v43 = vadd.f32 %v432_v38, %v294_v42 }
 0x1d7   :  { %v516_v44 = vpop.f32.mrf.mxu1 }
 0x1d8   :  { %v299_v46 = vmax.f32 %v295_v43, 0.0 }
 0x1da   :  { %v300_v47 = vpack.c.bf16 %v299_v46, %v298_v45 }
 0x1dc   :  { %534 = vmatmul.mubr.bf16.vlgmr.msra.gmra.mxu0 %v300_v47 }
 0x29c   :  { %v406_v49 = vpop.f32.mrf.mxu0 }
 0x29d   :  { %v407_v50 = vadd.f32 %v441_v48, %v406_v49 }
 0x29e   :  { %v535_v51 = vpop.f32.mrf.mxu0 }
 0x29f   :  { %v413_v52 = vmax.f32 %v407_v50, 0.0 }
 0x2a0   :  { %v409_v53 = vpop.f32.mrf.mxu0 }
 0x2a1   :  { %415 = vst [vmem:[%s746_s7] sm:$0xff] %v413_v52  ;;  %v410_v54 = vadd.f32 %v441_v48, %v409_v53 }
 0x2a2   :  { %v536_v55 = vpop.f32.mrf.mxu0 }
 0x2a3   :  { %v414_v56 = vmax.f32 %v410_v54, 0.0 }
 0x2a5   :  { %416 = vst [vmem:[%s746_s7 + $0x8] sm:$0xff] %v414_v56 }
 0x2a6   :  { %421 = vsyncpa [#allocation3], 1 }
 0x2a7   :  { %422 = vsyncpa [#allocation5], 1 }

</bundles_post_ra>
